<compile_context>
chip_gen: v7x
topology: tpu7x:2x2x1
jax: 0.10.0
libtpu: 0.0.40
codegen_flags: <defaults>
</compile_context>

<pallas_src>
import functools
import math

import jax
import jax.numpy as jnp
from jax import lax
from jax.experimental import pallas as pl
from jax.experimental.pallas import tpu as pltpu


def _round_up(x, m):
    return ((x + m - 1) // m) * m


def _cdiv(a, b):
    return -(-a // b)


def _conv_kernel(x_ref, xh_ref, w_ref, b_ref, o_ref, slab_ref, *,
                 taps, cp, t_lanes):
    """One grid step: (batch n, spatial tile sp, C_out tile co).

    x_ref   : (P*Cp, T)      current spatial tile of the phase-decomposed input
    xh_ref  : (P*Cp, Hh)     halo: the next Hh flat positions after the tile
    w_ref   : (TCo, K*K*Cp)  folded filter block
    b_ref   : (TCo, 1)       bias column (f32)
    o_ref   : (TCo, T)       lane-dense output tile
    slab_ref: (K*K*Cp, T)    VMEM patch slab (in-VMEM im2col), reused over co
    """
    # Build the patch slab once per (n, spatial) tile; it only depends on x,
    # which stays resident across the (innermost, "arbitrary") c_out axis.
    @pl.when(pl.program_id(2) == 0)
    def _build_slab():
        for t, (p_idx, off) in enumerate(taps):      # static K*K unrolled loop
            r0 = t * cp
            p0 = p_idx * cp
            main = t_lanes - off
            if main > 0:
                slab_ref[pl.ds(r0, cp), pl.ds(0, main)] = \
                    x_ref[pl.ds(p0, cp), pl.ds(off, main)]
            if off > 0:
                slab_ref[pl.ds(r0, cp), pl.ds(main, off)] = \
                    xh_ref[pl.ds(p0, cp), pl.ds(0, off)]

    # Single deep matmul on the MXU: contraction over K*K*Cp.
    acc = jnp.dot(w_ref[...], slab_ref[...], preferred_element_type=jnp.float32)
    o_ref[...] = (acc + b_ref[...]).astype(o_ref.dtype)


def custom_conv2d_forward(x, weight, bias=None, stride=1, padding=0,
                          *, lane_tile=None, compute_dtype=jnp.bfloat16):
    """Mirrors CustomConv2DFunction.forward: NCHW input, OIHW weight, f32 out."""
    N, C, H, W = x.shape
    Co, Ci, K, K2 = weight.shape
    assert K == K2 and Ci == C
    assert isinstance(stride, int) and stride > 0
    assert isinstance(padding, int) and padding >= 0
    assert K <= H + 2 * padding and K <= W + 2 * padding
    if bias is None:
        bias = jnp.zeros((Co,), jnp.float32)
    s = stride

    OH = (H + 2 * padding - K) // s + 1
    OW = (W + 2 * padding - K) // s + 1

    # ---- geometry of the stride-phase-decomposed, flattened input ----
    P = s * s                               # number of stride phases
    kb = (K - 1) // s                       # max per-phase tap block offset
    Wq = OW + kb                            # per-phase width
    Hq = OH + kb                            # per-phase height
    Cp = _round_up(C, 8)                    # sublane-aligned channel block
    PCp = P * Cp
    KKCp = K * K * Cp                       # folded contraction depth
    LO = OH * Wq                            # valid extent of the flat q-grid
    max_off = kb * Wq + kb                  # largest static tap offset
    Hh = _round_up(max(max_off, 1), 128)    # halo width (lane-aligned)

    # ---- hardware query: VMEM capacity + MXU width (generation aware) ----
    vmem_cap = 64 << 20                     # conservative default (v7x per-TC)
    try:
        vmem_cap = int(getattr(pltpu.get_tpu_info(), "vmem_capacity_bytes",
                               vmem_cap))
    except Exception:
        pass
    mxu_rows = 128
    try:
        kind = jax.devices()[0].device_kind.lower()
        if not any(v in kind for v in ("v2", "v3", "v4", "v5")):
            mxu_rows = 256                  # v6e / v7x: 2x256^2 MXU
    except Exception:
        pass

    # ---- C_out tiling ----
    co8 = _round_up(Co, 8)
    if co8 <= 128:
        tco, Co_pad = co8, co8
    elif mxu_rows == 256 and co8 >= 256:
        tco, Co_pad = 256, _round_up(Co, 256)
    else:
        tco, Co_pad = 128, _round_up(Co, 128)
    n_co = Co_pad // tco

    # ---- spatial (lane) tiling: largest tile whose double-buffered footprint
    #      fits the per-generation VMEM budget ----
    ebytes = jnp.dtype(compute_dtype).itemsize

    def footprint(t):
        return (2 * PCp * (t + Hh) * ebytes     # x tile + halo (double buffered)
                + 2 * tco * KKCp * ebytes       # weight block
                + 2 * tco * 4                   # bias
                + 2 * tco * t * 4               # f32 output tile
                + KKCp * t * ebytes)            # patch-slab scratch

    target = lane_tile if lane_tile is not None else 4096
    T = _round_up(min(max(LO, 1), target), Hh)
    budget = int(0.7 * vmem_cap)
    while footprint(T) > budget and T > Hh:
        T = max(Hh, _round_up(T // 2, Hh))
    # Tiny single-image / single-C_out-tile calls still get >= 2 grid steps so
    # both TensorCores (v7x megacore) have work.
    if N * n_co == 1 and LO > Hh:
        T = min(T, _round_up(_cdiv(LO, 2), Hh))

    nt = _cdiv(LO, T)
    LO_pad = nt * T
    hb = T // Hh                            # halo blocks per spatial tile

    # ---- input prep: channel pad + conv zero-pad + phase decomposition ----
    need_flat = nt * T + Hh                 # flat length every tap/halo needs
    Hq_alloc = max(Hq, _cdiv(need_flat, Wq))
    Lflat = Hq_alloc * Wq
    Hp1, Wp1 = s * Hq_alloc, s * Wq

    xb = jnp.pad(x.astype(compute_dtype),
                 ((0, 0), (0, Cp - C), (padding, padding), (padding, padding)))
    xb = xb[:, :, :Hp1, :Wp1]               # crop (rare) ...
    xb = jnp.pad(xb, ((0, 0), (0, 0),
                      (0, Hp1 - xb.shape[2]), (0, Wp1 - xb.shape[3])))
    # (N,Cp,Hq,s,Wq,s) -> (N,s,s,Cp,Hq,Wq) -> (N, P*Cp, Lflat); free for s == 1.
    xflat = (xb.reshape(N, Cp, Hq_alloc, s, Wq, s)
               .transpose(0, 3, 5, 1, 2, 4)
               .reshape(N, PCp, Lflat))

    # ---- folded weights (Co_pad, K*K*Cp) + bias column ----
    w2 = weight.astype(compute_dtype).transpose(0, 2, 3, 1)        # (Co,K,K,C)
    w2 = jnp.pad(w2, ((0, Co_pad - Co), (0, 0), (0, 0), (0, Cp - C)))
    w2 = w2.reshape(Co_pad, KKCp)
    b2 = jnp.pad(bias.astype(jnp.float32), (0, Co_pad - Co)).reshape(Co_pad, 1)

    # Static tap table: (phase index, flat offset) for every (i, j).
    taps = tuple(((i % s) * s + (j % s), (i // s) * Wq + (j // s))
                 for i in range(K) for j in range(K))

    kernel = functools.partial(_conv_kernel, taps=taps, cp=Cp, t_lanes=T)

    grid = (N, nt, n_co)                    # c_out innermost: x tile resident

    cost = pl.CostEstimate(
        flops=2 * N * Co * C * K * K * OH * OW,
        transcendentals=0,
        bytes_accessed=(xflat.size * ebytes
                        + N * nt * n_co * tco * KKCp * ebytes
                        + 4 * N * Co_pad * LO_pad))

    vmem_limit = int(min(vmem_cap, max(32 << 20, 2 * footprint(T) + (4 << 20))))

    out_flat = pl.pallas_call(
        kernel,
        out_shape=jax.ShapeDtypeStruct((N, Co_pad, LO_pad), jnp.float32),
        grid_spec=pltpu.PrefetchScalarGridSpec(
            num_scalar_prefetch=0,
            grid=grid,
            in_specs=[
                # main spatial tile of the flattened input (resident over co)
                pl.BlockSpec((None, PCp, T), lambda n, sp, co: (n, 0, sp)),
                # halo: the Hh flat positions following the tile
                pl.BlockSpec((None, PCp, Hh),
                             lambda n, sp, co: (n, 0, (sp + 1) * hb)),
                pl.BlockSpec((tco, KKCp), lambda n, sp, co: (co, 0)),
                pl.BlockSpec((tco, 1), lambda n, sp, co: (co, 0)),
            ],
            out_specs=pl.BlockSpec((None, tco, T),
                                   lambda n, sp, co: (n, co, sp)),
            scratch_shapes=[pltpu.VMEM((KKCp, T), compute_dtype)],
        ),
        compiler_params=pltpu.CompilerParams(
            dimension_semantics=("parallel", "parallel", "arbitrary"),
            vmem_limit_bytes=vmem_limit),
        cost_estimate=cost,
    )(xflat, xflat, w2, b2)

    # ---- fold the flat q-grid back to NCHW (slice + free reshape) ----
    out = out_flat[:, :Co, :LO].reshape(N, Co, OH, Wq)[:, :, :, :OW]
    return out


def init_params(key, in_channels, out_channels, kernel_size):
    # Kaiming-uniform(a=sqrt(5)) => U(-1/sqrt(fan_in), 1/sqrt(fan_in)); bias same.
    fan_in = in_channels * kernel_size * kernel_size
    bound = 1.0 / math.sqrt(fan_in)
    kw, kb = jax.random.split(key)
    weight = jax.random.uniform(
        kw, (out_channels, in_channels, kernel_size, kernel_size),
        dtype=jnp.float32, minval=-bound, maxval=bound)
    bias = jax.random.uniform(
        kb, (out_channels,), dtype=jnp.float32, minval=-bound, maxval=bound)
    return weight, bias


def _reference(x, weight, bias, stride, padding):
    # Same bf16 operand rounding the kernel uses, accumulated in f32.
    xr = x.astype(jnp.bfloat16).astype(jnp.float32)
    wr = weight.astype(jnp.bfloat16).astype(jnp.float32)
    out = lax.conv_general_dilated(
        xr, wr, window_strides=(stride, stride),
        padding=[(padding, padding), (padding, padding)],
        dimension_numbers=("NCHW", "OIHW", "NCHW"),
        precision=lax.Precision.HIGHEST)
    return out + bias.reshape(1, -1, 1, 1)


if __name__ == "__main__":
    key = jax.random.PRNGKey(0)

    # (N, C_in, H, W, C_out, K, stride, padding, lane_tile)
    cases = [
        # CustomConv2d(4, 8, 3, stride=1, padding=1) on a 2x4x16x16 input.
        (2, 4, 16, 16, 8, 3, 1, 1, None),
        # stride-2 / no-padding path (exercises the phase decomposition).
        (2, 4, 16, 16, 8, 3, 2, 0, None),
        # multi spatial tile + halo, C_out tiling, channel padding (C=12).
        (2, 12, 16, 16, 160, 3, 1, 1, 128),
    ]
    for idx, (N, C, H, W, Co, K, s, p, lt) in enumerate(cases):
        kx, kp = jax.random.split(jax.random.fold_in(key, idx))
        x = jax.random.normal(kx, (N, C, H, W), dtype=jnp.float32)
        weight, bias = init_params(kp, C, Co, K)

        conv = jax.jit(functools.partial(custom_conv2d_forward,
                                         stride=s, padding=p, lane_tile=lt))
        out = jax.block_until_ready(conv(x, weight, bias))

        OH = (H + 2 * p - K) // s + 1
        OW = (W + 2 * p - K) // s + 1
        assert out.shape == (N, Co, OH, OW), (out.shape, (N, Co, OH, OW))

        ref = _reference(x, weight, bias, s, p)
        err = float(jnp.max(jnp.abs(out - ref)))
        assert err < 2e-3, f"case {idx}: max abs err {err}"

    print("KERNEL_OK")
</pallas_src>

<mosaic_0001>
module attributes {stable_mosaic.version = 11 : i64} {
  func.func @_conv_kernel(%arg0: i32, %arg1: i32, %arg2: i32, %arg3: memref<1x8x384xbf16, #tpu.memory_space<vmem>>, %arg4: memref<1x8x128xbf16, #tpu.memory_space<vmem>>, %arg5: memref<8x72xbf16, #tpu.memory_space<vmem>>, %arg6: memref<8x1xf32, #tpu.memory_space<vmem>>, %arg7: memref<1x8x384xf32, #tpu.memory_space<vmem>>, %arg8: memref<72x384xbf16, #tpu.memory_space<vmem>>) attributes {dimension_semantics = [#tpu.dimension_semantics<parallel>, #tpu.dimension_semantics<parallel>, #tpu.dimension_semantics<arbitrary>], iteration_bounds = array<i64: 2, 1, 1>, scalar_prefetch = 0 : i64, scratch_operands = 1 : i64, tpu.core_type = #tpu.core_type<tc>, window_params = [{transform_indices = @transform_0, window_bounds = array<i64: 1, 8, 384>}, {transform_indices = @transform_1, window_bounds = array<i64: 1, 8, 128>}, {transform_indices = @transform_2, window_bounds = array<i64: 8, 72>}, {transform_indices = @transform_3, window_bounds = array<i64: 8, 1>}, {transform_indices = @transform_4, window_bounds = array<i64: 1, 8, 384>}]} {
    %c0_i32 = arith.constant 0 : i32
    %0 = arith.cmpi eq, %arg2, %c0_i32 : i32
    %1 = arith.extui %0 : i1 to i32
    %c0_i32_0 = arith.constant 0 : i32
    %2 = arith.cmpi ne, %1, %c0_i32_0 : i32
    scf.if %2 {
      %c0_9 = arith.constant 0 : index
      %c0_10 = arith.constant 0 : index
      %c0_11 = arith.constant 0 : index
      %12 = vector.load %arg3[%c0_9, %c0_10, %c0_11] : memref<1x8x384xbf16, #tpu.memory_space<vmem>>, vector<1x8x384xbf16>
      %13 = vector.shape_cast %12 : vector<1x8x384xbf16> to vector<8x384xbf16>
      %c0_12 = arith.constant 0 : index
      %c0_13 = arith.constant 0 : index
      %14 = vector.load %arg8[%c0_12, %c0_13] : memref<72x384xbf16, #tpu.memory_space<vmem>>, vector<8x384xbf16>
      tpu.vector_store %arg8[%c0_12, %c0_13], %13 {strides = array<i32>} : memref<72x384xbf16, #tpu.memory_space<vmem>>, vector<8x384xbf16>,
      %c0_14 = arith.constant 0 : index
      %c0_15 = arith.constant 0 : index
      %c1 = arith.constant 1 : index
      %15 = vector.load %arg3[%c0_14, %c0_15, %c1] : memref<1x8x384xbf16, #tpu.memory_space<vmem>>, vector<1x8x383xbf16>
      %16 = vector.shape_cast %15 : vector<1x8x383xbf16> to vector<8x383xbf16>
      %c8 = arith.constant 8 : index
      %c0_16 = arith.constant 0 : index
      %17 = vector.load %arg8[%c8, %c0_16] : memref<72x384xbf16, #tpu.memory_space<vmem>>, vector<8x383xbf16>
      tpu.vector_store %arg8[%c8, %c0_16], %16 {strides = array<i32>} : memref<72x384xbf16, #tpu.memory_space<vmem>>, vector<8x383xbf16>,
      %c0_17 = arith.constant 0 : index
      %c0_18 = arith.constant 0 : index
      %c0_19 = arith.constant 0 : index
      %18 = vector.load %arg4[%c0_17, %c0_18, %c0_19] : memref<1x8x128xbf16, #tpu.memory_space<vmem>>, vector<1x8x1xbf16>
      %19 = vector.shape_cast %18 : vector<1x8x1xbf16> to vector<8x1xbf16>
      %c8_20 = arith.constant 8 : index
      %c383 = arith.constant 383 : index
      %20 = vector.load %arg8[%c8_20, %c383] : memref<72x384xbf16, #tpu.memory_space<vmem>>, vector<8x1xbf16>
      tpu.vector_store %arg8[%c8_20, %c383], %19 {strides = array<i32>} : memref<72x384xbf16, #tpu.memory_space<vmem>>, vector<8x1xbf16>,
      %c0_21 = arith.constant 0 : index
      %c0_22 = arith.constant 0 : index
      %c2 = arith.constant 2 : index
      %21 = vector.load %arg3[%c0_21, %c0_22, %c2] : memref<1x8x384xbf16, #tpu.memory_space<vmem>>, vector<1x8x382xbf16>
      %22 = vector.shape_cast %21 : vector<1x8x382xbf16> to vector<8x382xbf16>
      %c16 = arith.constant 16 : index
      %c0_23 = arith.constant 0 : index
      %23 = vector.load %arg8[%c16, %c0_23] : memref<72x384xbf16, #tpu.memory_space<vmem>>, vector<8x382xbf16>
      tpu.vector_store %arg8[%c16, %c0_23], %22 {strides = array<i32>} : memref<72x384xbf16, #tpu.memory_space<vmem>>, vector<8x382xbf16>,
      %c0_24 = arith.constant 0 : index
      %c0_25 = arith.constant 0 : index
      %c0_26 = arith.constant 0 : index
      %24 = vector.load %arg4[%c0_24, %c0_25, %c0_26] : memref<1x8x128xbf16, #tpu.memory_space<vmem>>, vector<1x8x2xbf16>
      %25 = vector.shape_cast %24 : vector<1x8x2xbf16> to vector<8x2xbf16>
      %c16_27 = arith.constant 16 : index
      %c382 = arith.constant 382 : index
      %26 = vector.load %arg8[%c16_27, %c382] : memref<72x384xbf16, #tpu.memory_space<vmem>>, vector<8x2xbf16>
      tpu.vector_store %arg8[%c16_27, %c382], %25 {strides = array<i32>} : memref<72x384xbf16, #tpu.memory_space<vmem>>, vector<8x2xbf16>,
      %c0_28 = arith.constant 0 : index
      %c0_29 = arith.constant 0 : index
      %c18 = arith.constant 18 : index
      %27 = vector.load %arg3[%c0_28, %c0_29, %c18] : memref<1x8x384xbf16, #tpu.memory_space<vmem>>, vector<1x8x366xbf16>
      %28 = vector.shape_cast %27 : vector<1x8x366xbf16> to vector<8x366xbf16>
      %c24 = arith.constant 24 : index
      %c0_30 = arith.constant 0 : index
      %29 = vector.load %arg8[%c24, %c0_30] : memref<72x384xbf16, #tpu.memory_space<vmem>>, vector<8x366xbf16>
      tpu.vector_store %arg8[%c24, %c0_30], %28 {strides = array<i32>} : memref<72x384xbf16, #tpu.memory_space<vmem>>, vector<8x366xbf16>,
      %c0_31 = arith.constant 0 : index
      %c0_32 = arith.constant 0 : index
      %c0_33 = arith.constant 0 : index
      %30 = vector.load %arg4[%c0_31, %c0_32, %c0_33] : memref<1x8x128xbf16, #tpu.memory_space<vmem>>, vector<1x8x18xbf16>
      %31 = vector.shape_cast %30 : vector<1x8x18xbf16> to vector<8x18xbf16>
      %c24_34 = arith.constant 24 : index
      %c366 = arith.constant 366 : index
      %32 = vector.load %arg8[%c24_34, %c366] : memref<72x384xbf16, #tpu.memory_space<vmem>>, vector<8x18xbf16>
      tpu.vector_store %arg8[%c24_34, %c366], %31 {strides = array<i32>} : memref<72x384xbf16, #tpu.memory_space<vmem>>, vector<8x18xbf16>,
      %c0_35 = arith.constant 0 : index
      %c0_36 = arith.constant 0 : index
      %c19 = arith.constant 19 : index
      %33 = vector.load %arg3[%c0_35, %c0_36, %c19] : memref<1x8x384xbf16, #tpu.memory_space<vmem>>, vector<1x8x365xbf16>
      %34 = vector.shape_cast %33 : vector<1x8x365xbf16> to vector<8x365xbf16>
      %c32 = arith.constant 32 : index
      %c0_37 = arith.constant 0 : index
      %35 = vector.load %arg8[%c32, %c0_37] : memref<72x384xbf16, #tpu.memory_space<vmem>>, vector<8x365xbf16>
      tpu.vector_store %arg8[%c32, %c0_37], %34 {strides = array<i32>} : memref<72x384xbf16, #tpu.memory_space<vmem>>, vector<8x365xbf16>,
      %c0_38 = arith.constant 0 : index
      %c0_39 = arith.constant 0 : index
      %c0_40 = arith.constant 0 : index
      %36 = vector.load %arg4[%c0_38, %c0_39, %c0_40] : memref<1x8x128xbf16, #tpu.memory_space<vmem>>, vector<1x8x19xbf16>
      %37 = vector.shape_cast %36 : vector<1x8x19xbf16> to vector<8x19xbf16>
      %c32_41 = arith.constant 32 : index
      %c365 = arith.constant 365 : index
      %38 = vector.load %arg8[%c32_41, %c365] : memref<72x384xbf16, #tpu.memory_space<vmem>>, vector<8x19xbf16>
      tpu.vector_store %arg8[%c32_41, %c365], %37 {strides = array<i32>} : memref<72x384xbf16, #tpu.memory_space<vmem>>, vector<8x19xbf16>,
      %c0_42 = arith.constant 0 : index
      %c0_43 = arith.constant 0 : index
      %c20 = arith.constant 20 : index
      %39 = vector.load %arg3[%c0_42, %c0_43, %c20] : memref<1x8x384xbf16, #tpu.memory_space<vmem>>, vector<1x8x364xbf16>
      %40 = vector.shape_cast %39 : vector<1x8x364xbf16> to vector<8x364xbf16>
      %c40 = arith.constant 40 : index
      %c0_44 = arith.constant 0 : index
      %41 = vector.load %arg8[%c40, %c0_44] : memref<72x384xbf16, #tpu.memory_space<vmem>>, vector<8x364xbf16>
      tpu.vector_store %arg8[%c40, %c0_44], %40 {strides = array<i32>} : memref<72x384xbf16, #tpu.memory_space<vmem>>, vector<8x364xbf16>,
      %c0_45 = arith.constant 0 : index
      %c0_46 = arith.constant 0 : index
      %c0_47 = arith.constant 0 : index
      %42 = vector.load %arg4[%c0_45, %c0_46, %c0_47] : memref<1x8x128xbf16, #tpu.memory_space<vmem>>, vector<1x8x20xbf16>
      %43 = vector.shape_cast %42 : vector<1x8x20xbf16> to vector<8x20xbf16>
      %c40_48 = arith.constant 40 : index
      %c364 = arith.constant 364 : index
      %44 = vector.load %arg8[%c40_48, %c364] : memref<72x384xbf16, #tpu.memory_space<vmem>>, vector<8x20xbf16>
      tpu.vector_store %arg8[%c40_48, %c364], %43 {strides = array<i32>} : memref<72x384xbf16, #tpu.memory_space<vmem>>, vector<8x20xbf16>,
      %c0_49 = arith.constant 0 : index
      %c0_50 = arith.constant 0 : index
      %c36 = arith.constant 36 : index
      %45 = vector.load %arg3[%c0_49, %c0_50, %c36] : memref<1x8x384xbf16, #tpu.memory_space<vmem>>, vector<1x8x348xbf16>
      %46 = vector.shape_cast %45 : vector<1x8x348xbf16> to vector<8x348xbf16>
      %c48 = arith.constant 48 : index
      %c0_51 = arith.constant 0 : index
      %47 = vector.load %arg8[%c48, %c0_51] : memref<72x384xbf16, #tpu.memory_space<vmem>>, vector<8x348xbf16>
      tpu.vector_store %arg8[%c48, %c0_51], %46 {strides = array<i32>} : memref<72x384xbf16, #tpu.memory_space<vmem>>, vector<8x348xbf16>,
      %c0_52 = arith.constant 0 : index
      %c0_53 = arith.constant 0 : index
      %c0_54 = arith.constant 0 : index
      %48 = vector.load %arg4[%c0_52, %c0_53, %c0_54] : memref<1x8x128xbf16, #tpu.memory_space<vmem>>, vector<1x8x36xbf16>
      %49 = vector.shape_cast %48 : vector<1x8x36xbf16> to vector<8x36xbf16>
      %c48_55 = arith.constant 48 : index
      %c348 = arith.constant 348 : index
      %50 = vector.load %arg8[%c48_55, %c348] : memref<72x384xbf16, #tpu.memory_space<vmem>>, vector<8x36xbf16>
      tpu.vector_store %arg8[%c48_55, %c348], %49 {strides = array<i32>} : memref<72x384xbf16, #tpu.memory_space<vmem>>, vector<8x36xbf16>,
      %c0_56 = arith.constant 0 : index
      %c0_57 = arith.constant 0 : index
      %c37 = arith.constant 37 : index
      %51 = vector.load %arg3[%c0_56, %c0_57, %c37] : memref<1x8x384xbf16, #tpu.memory_space<vmem>>, vector<1x8x347xbf16>
      %52 = vector.shape_cast %51 : vector<1x8x347xbf16> to vector<8x347xbf16>
      %c56 = arith.constant 56 : index
      %c0_58 = arith.constant 0 : index
      %53 = vector.load %arg8[%c56, %c0_58] : memref<72x384xbf16, #tpu.memory_space<vmem>>, vector<8x347xbf16>
      tpu.vector_store %arg8[%c56, %c0_58], %52 {strides = array<i32>} : memref<72x384xbf16, #tpu.memory_space<vmem>>, vector<8x347xbf16>,
      %c0_59 = arith.constant 0 : index
      %c0_60 = arith.constant 0 : index
      %c0_61 = arith.constant 0 : index
      %54 = vector.load %arg4[%c0_59, %c0_60, %c0_61] : memref<1x8x128xbf16, #tpu.memory_space<vmem>>, vector<1x8x37xbf16>
      %55 = vector.shape_cast %54 : vector<1x8x37xbf16> to vector<8x37xbf16>
      %c56_62 = arith.constant 56 : index
      %c347 = arith.constant 347 : index
      %56 = vector.load %arg8[%c56_62, %c347] : memref<72x384xbf16, #tpu.memory_space<vmem>>, vector<8x37xbf16>
      tpu.vector_store %arg8[%c56_62, %c347], %55 {strides = array<i32>} : memref<72x384xbf16, #tpu.memory_space<vmem>>, vector<8x37xbf16>,
      %c0_63 = arith.constant 0 : index
      %c0_64 = arith.constant 0 : index
      %c38 = arith.constant 38 : index
      %57 = vector.load %arg3[%c0_63, %c0_64, %c38] : memref<1x8x384xbf16, #tpu.memory_space<vmem>>, vector<1x8x346xbf16>
      %58 = vector.shape_cast %57 : vector<1x8x346xbf16> to vector<8x346xbf16>
      %c64 = arith.constant 64 : index
      %c0_65 = arith.constant 0 : index
      %59 = vector.load %arg8[%c64, %c0_65] : memref<72x384xbf16, #tpu.memory_space<vmem>>, vector<8x346xbf16>
      tpu.vector_store %arg8[%c64, %c0_65], %58 {strides = array<i32>} : memref<72x384xbf16, #tpu.memory_space<vmem>>, vector<8x346xbf16>,
      %c0_66 = arith.constant 0 : index
      %c0_67 = arith.constant 0 : index
      %c0_68 = arith.constant 0 : index
      %60 = vector.load %arg4[%c0_66, %c0_67, %c0_68] : memref<1x8x128xbf16, #tpu.memory_space<vmem>>, vector<1x8x38xbf16>
      %61 = vector.shape_cast %60 : vector<1x8x38xbf16> to vector<8x38xbf16>
      %c64_69 = arith.constant 64 : index
      %c346 = arith.constant 346 : index
      %62 = vector.load %arg8[%c64_69, %c346] : memref<72x384xbf16, #tpu.memory_space<vmem>>, vector<8x38xbf16>
      tpu.vector_store %arg8[%c64_69, %c346], %61 {strides = array<i32>} : memref<72x384xbf16, #tpu.memory_space<vmem>>, vector<8x38xbf16>,
    } else {
    }
    %c0 = arith.constant 0 : index
    %c0_1 = arith.constant 0 : index
    %3 = vector.load %arg5[%c0, %c0_1] : memref<8x72xbf16, #tpu.memory_space<vmem>>, vector<8x72xbf16>
    %c0_2 = arith.constant 0 : index
    %c0_3 = arith.constant 0 : index
    %4 = vector.load %arg8[%c0_2, %c0_3] : memref<72x384xbf16, #tpu.memory_space<vmem>>, vector<72x384xbf16>
    %cst = arith.constant dense<0.000000e+00> : vector<8x384xf32>
    %5 = tpu.matmul %3, %4, %cst {dimension_numbers = #tpu.dot_dimension_numbers<[1], [0], [0], [1], [0, 0, 1, 1], [], []>} : vector<8x72xbf16>, vector<72x384xbf16>, vector<8x384xf32> -> vector<8x384xf32>
    %c0_4 = arith.constant 0 : index
    %c0_5 = arith.constant 0 : index
    %6 = vector.load %arg6[%c0_4, %c0_5] : memref<8x1xf32, #tpu.memory_space<vmem>>, vector<8x1xf32>
    %7 = vector.broadcast %6 : vector<8x1xf32> to vector<8x384xf32>
    %8 = arith.addf %5, %7 : vector<8x384xf32>
    %c0_6 = arith.constant 0 : index
    %c0_7 = arith.constant 0 : index
    %c0_8 = arith.constant 0 : index
    %9 = vector.load %arg7[%c0_6, %c0_7, %c0_8] : memref<1x8x384xf32, #tpu.memory_space<vmem>>, vector<1x8x384xf32>
    %10 = vector.shape_cast %9 : vector<1x8x384xf32> to vector<8x384xf32>
    %11 = vector.shape_cast %8 : vector<8x384xf32> to vector<1x8x384xf32>
    tpu.vector_store %arg7[%c0_6, %c0_7, %c0_8], %11 {strides = array<i32>} : memref<1x8x384xf32, #tpu.memory_space<vmem>>, vector<1x8x384xf32>,
    return
  }
  func.func @transform_0(%arg0: i32, %arg1: i32, %arg2: i32) -> (i32, i32, i32) {
    %c0_i32 = arith.constant 0 : i32
    %c0_i32_0 = arith.constant 0 : i32
    return %arg0, %c0_i32, %arg1 : i32, i32, i32
  }
  func.func @transform_1(%arg0: i32, %arg1: i32, %arg2: i32) -> (i32, i32, i32) {
    %c1_i32 = arith.constant 1 : i32
    %0 = arith.addi %arg1, %c1_i32 : i32
    %c3_i32 = arith.constant 3 : i32
    %1 = arith.muli %0, %c3_i32 : i32
    %c0_i32 = arith.constant 0 : i32
    %c0_i32_0 = arith.constant 0 : i32
    return %arg0, %c0_i32, %1 : i32, i32, i32
  }
  func.func @transform_2(%arg0: i32, %arg1: i32, %arg2: i32) -> (i32, i32) {
    %c0_i32 = arith.constant 0 : i32
    %c0_i32_0 = arith.constant 0 : i32
    return %arg2, %c0_i32 : i32, i32
  }
  func.func @transform_3(%arg0: i32, %arg1: i32, %arg2: i32) -> (i32, i32) {
    %c0_i32 = arith.constant 0 : i32
    %c0_i32_0 = arith.constant 0 : i32
    return %arg2, %c0_i32 : i32, i32
  }
  func.func @transform_4(%arg0: i32, %arg1: i32, %arg2: i32) -> (i32, i32, i32) {
    %c0_i32 = arith.constant 0 : i32
    return %arg0, %arg2, %arg1 : i32, i32, i32
  }
}

</mosaic_0001>

<bundles_post_ra>
// kernel: custom_conv2d_forward.1
= control target key start
LH: loop header
LB: loop body
LE: loop exit
PB: predicated region body
PF: predicated region fallthrough
CT: control target
= control target key end

     0   :  { %s1069_s15 = smov 0   ;;  %s1071_s16 = smov 0   ;;  %s1166_s0 = inlined_call_operand.vmem [shape: bf16[2,8,522], index: 0, kind: input, shape index: {}, may-alias: {0,1}]   ;;  %s1167_s1 = inlined_call_operand.vmem [shape: bf16[2,8,522], index: 1, kind: input, shape index: {}, may-alias: {0,1}]   ;;  %s1168_s2 = inlined_call_operand.vmem [shape: bf16[8,72], index: 2, kind: input, shape index: {}]   ;;  %s1169_s3 = inlined_call_operand.vmem [shape: f32[8,1], index: 3, kind: input, shape index: {}]   ;;  %s1170_s4 = inlined_call_operand.vmem [shape: f32[2,8,384], index: 4, kind: output, shape index: {}]  }
   0x1   :  { %s1073_s17 = smov 0  }
   0x2 LB: > { %s33_s18 = sadd.s32 1, %s1027_s16  ;;  %p918_p0 = scmp.ge.s32.totalorder %s1031_s17, 1  ;;  %s1031_s17 = sphi %s1073_s17, %s14_s17   ;;  %s1027_s16 = sphi %s1071_s16, %s1172_s16   ;;  %s1023_s15 = sphi %s1069_s15, %s1171_s15  }
   0x3   : > { %p35_p1 = scmp.ge.s32.totalorder %s33_s18, 2  ;;  %p241_p2 = scmp.lt.s32.totalorder %s1031_s17, 3 }
   0x5   : > { %s1174_s18 = smov (%p35_p1, %s33_s18), 0  ;;  %p242_p3 = pnand %p918_p0, %p241_p2 }
   0x6   : > { %p306_p4 = scmp.lt.s32.totalorder (!%p242_p3), %s1023_s15, 1  ;;  %s1033_s23 = smov (!%p242_p3), 126   ;;  %v1035_v5 = vmov (!%p242_p3), 0.0   ;;  %v1042_v19 = vmov (!%p242_p3), 0   ;;  %vm1043_vm0 = vmmov (!%p242_p3), 0   ;;  %v582_v20 = vld [vmem:[%s1169_s3] sm:$0xff] (!%p242_p3) }
   0x7   : > { %245 = sbr.rel (%p242_p3) target bundleno = 408 (0x198), region = 36  ;;  %s1034_s24 = smov (!%p242_p3), 127   ;;  %950 = vmatprep.subr.bf16.mxu1 (!%p242_p3), %v1035_v5  ;;  %706 = vmatprep.mubr.bf16.mxu0 (!%p242_p3), %v1042_v19  ;;  %vm404_vm1 = vcmask (!%p242_p3), 1027072   ;;  %vm379_vm2 = vcmask (!%p242_p3), 1035264   ;;  %vm372_vm3 = vcmask (!%p242_p3), 1043456   ;;  %vm399_vm4 = vcmask (!%p242_p3), 1031168  }
   0x8   : > { %s1036_s29 = smov (!%p242_p3), 110   ;;  %s1037_s30 = smov (!%p242_p3), 109   ;;  %1003 = vset.pattern.permute.xlu0 (!%p242_p3), %v1042_v19  ;;  %960 = vmatprep.mubr.msk.bf16.mxu1 (!%p242_p3), %vm1043_vm0, %v1035_v5  ;;  %vm374_vm5 = vcmask (!%p242_p3), 1039360   ;;  %vm429_vm6 = vcmask (!%p242_p3), 896000   ;;  %vm424_vm7 = vcmask (!%p242_p3), 900096   ;;  %vm386_vm8 = vcmask (!%p242_p3), 1044472  }
   0x9   : > { %s1038_s5 = smov (!%p242_p3), 108   ;;  %s1039_s6 = smov (!%p242_p3), 92   ;;  %vm454_vm9 = vcmask (!%p242_p3), 887808   ;;  %vm449_vm10 = vcmask (!%p242_p3), 891904   ;;  %vm479_vm11 = vcmask (!%p242_p3), 879616   ;;  %vm411_vm12 = vcmask (!%p242_p3), 1044464  }
   0xa   : > { %s1040_s7 = smov (!%p242_p3), 91   ;;  %s1041_s8 = smov (!%p242_p3), 90   ;;  %vm474_vm13 = vcmask (!%p242_p3), 883712   ;;  %vm436_vm14 = vcmask (!%p242_p3), 1044336   ;;  %vm504_vm15 = vcmask (!%p242_p3), 748544   ;;  %vm499_vm0 = vcmask (!%p242_p3), 752640  }
   0xe   : > { %s1176_s15 = smov (!%p306_p4, %s1023_s15), 1 }
   0xf   : > { %s964_s19 = smul.u32 20, %s1176_s15 }
  0x10   : > { %s966_s13 = smul.u32 24, %s1176_s15 }
  0x11   : > { %s1093_s22 = scalar_lea.vmem %s1166_s0, %s964_s19  ;;  %s943_s25 = sadd.s32 12, %s964_s19 }
  0x12   : > { %v1096_v0 = vld [vmem:[%s1093_s22] sm:$0xff]  ;;  %v389_v1 = vld [vmem:[%s1093_s22 + $0x8] sm:$0xf]  ;;  %s1107_s28 = scalar_lea.vmem %s1167_s1, %s943_s25  ;;  %s351_s20 = scalar_lea.vmem %s1170_s4, %s966_s13 }
  0x13   : > { %392 = vrot.lane.b32.xlu1 %v1096_v0, %s1033_s23  ;;  %366 = vrot.lane.b32.xlu0 %v1096_v0, %s1034_s24  ;;  %v363_v2 = vld [vmem:[%s1093_s22 + $0x8] sm:$0xf]  ;;  %v381_v6 = vld [vmem:[%s1107_s28] sm:$0xf] }
  0x14   : > { %v414_v3 = vld [vmem:[%s1093_s22 + $0x8] sm:$0xf]  ;;  %v406_v9 = vld [vmem:[%s1107_s28] sm:$0xf] }
  0x15   : > { %v359_v4 = vld [vmem:[%s1093_s22 + $0x8] sm:$0xf]  ;;  %v431_v10 = vld [vmem:[%s1107_s28] sm:$0xf] }
  0x16   : > { %361 = vst [vmem:[#allocation2 + $0x8] sm:$0xf] %v359_v4  ;;  %v439_v7 = vld [vmem:[%s1093_s22 + $0x8] sm:$0xf]  ;;  %v456_v13 = vld [vmem:[%s1107_s28] sm:$0xf] }
  0x17   : > { %394 = vrot.lane.b32.xlu1 %v389_v1, %s1033_s23  ;;  %368 = vrot.lane.b32.xlu0 %v363_v2, %s1034_s24  ;;  %v464_v8 = vld [vmem:[%s1093_s22 + $0x8] sm:$0xf]  ;;  %v481_v14 = vld [vmem:[%s1107_s28] sm:$0xf] }
  0x18   : > { %v489_v11 = vld [vmem:[%s1093_s22 + $0x8] sm:$0xf]  ;;  %v506_v16 = vld [vmem:[%s1107_s28] sm:$0xf] }
  0x19   : > { %v514_v12 = vld [vmem:[%s1093_s22 + $0x8] sm:$0xf]  ;;  %v531_v17 = vld [vmem:[%s1107_s28] sm:$0xf] }
  0x1a   : > { %v539_v15 = vld [vmem:[%s1093_s22 + $0x8] sm:$0xf]  ;;  %v556_v18 = vld [vmem:[%s1107_s28] sm:$0xf] }
  0x1b   : > { %419 = vrot.lane.b32.xlu1 %v414_v3, %s1036_s29  ;;  %417 = vrot.lane.b32.xlu0 %v1096_v0, %s1036_s29 }
  0x1f   : > { %383 = vrot.lane.b32.xlu0 %v381_v6, %s1034_s24  ;;  %442 = vrot.lane.b32.xlu1 %v1096_v0, %s1037_s30 }
  0x23   : > { %444 = vrot.lane.b32.xlu0 %v439_v7, %s1037_s30  ;;  %467 = vrot.lane.b32.xlu1 %v1096_v0, %s1038_s5 }
  0x27   : > { %469 = vrot.lane.b32.xlu0 %v464_v8, %s1038_s5  ;;  %408 = vrot.lane.b32.xlu1 %v406_v9, %s1033_s23 }
  0x2b   : > { %433 = vrot.lane.b32.xlu0 %v431_v10, %s1036_s29  ;;  %492 = vrot.lane.b32.xlu1 %v1096_v0, %s1039_s6 }
  0x2f   : > { %494 = vrot.lane.b32.xlu0 %v489_v11, %s1039_s6  ;;  %517 = vrot.lane.b32.xlu1 %v1096_v0, %s1040_s7 }
  0x33   : > { %519 = vrot.lane.b32.xlu0 %v514_v12, %s1040_s7  ;;  %458 = vrot.lane.b32.xlu1 %v456_v13, %s1037_s30 }
  0x37   : > { %483 = vrot.lane.b32.xlu0 %v481_v14, %s1038_s5  ;;  %542 = vrot.lane.b32.xlu1 %v1096_v0, %s1041_s8 }
  0x3b   : > { %544 = vrot.lane.b32.xlu0 %v539_v15, %s1041_s8  ;;  %508 = vrot.lane.b32.xlu1 %v506_v16, %s1039_s6 }
  0x3f   : > { %533 = vrot.lane.b32.xlu0 %v531_v17, %s1040_s7  ;;  %558 = vrot.lane.b32.xlu1 %v556_v18, %s1041_s8 }
  0x43   : > { %585 = vperm.xlu0 %1003, %v582_v20  }
  0x85   : > { %v393_v21 = vpop.permute.xlu1 %392  ;;  %v367_v22 = vpop.permute.xlu0 %366 }
  0x86   : > { %v396_v23 = vrot.slane %v393_v21, 4  ;;  %v370_v26 = vrot.slane %v367_v22, 4 }
  0x89   : > { %v395_v24 = vpop.permute.xlu1 %394  ;;  %v369_v25 = vpop.permute.xlu0 %368 }
  0x8a   : > { %v397_v27 = vrot.slane %v395_v24, 4  ;;  %405 = vst.msk [vmem:[#allocation2 + $0x20] sm:$0xf] %vm404_vm1, %v395_v24  ;;  %v371_v28 = vrot.slane %v369_v25, 4  ;;  %vm529_vm1 = vcmask 740352  }
  0x8b   : > { %380 = vst.msk [vmem:[#allocation2 + $0x14] sm:$0xf] %vm379_vm2, %v369_v25  ;;  %vm461_vm2 = vcmask 1044328  }
  0x8c   : > { %v398_v29 = vsel %vm372_vm3, %v396_v23, %v397_v27  ;;  %v373_v30 = vsel %vm372_vm3, %v370_v26, %v371_v28  ;;  %v563_v28 = vld [vmem:[%s1168_s2] sm:$0xf] }
  0x8d   : > { %v400_v31 = vsel %vm399_vm4, %v393_v21, %v398_v29  ;;  %v375_v32 = vsel %vm374_vm5, %v367_v22, %v373_v30  ;;  %v420_v33 = vpop.permute.xlu1 %419  ;;  %v418_v34 = vpop.permute.xlu0 %417  ;;  %vm524_vm4 = vcmask 744448   ;;  %vm486_vm5 = vcmask 1044320  }
  0x8e   : > { %v422_v35 = vrot.slane %v420_v33, 4  ;;  %430 = vst.msk [vmem:[#allocation2 + $0x2c] sm:$0xf] %vm429_vm6, %v420_v33  ;;  %v421_v36 = vrot.slane %v418_v34, 4  ;;  %v923_v37 = vcombine.high %v1096_v0, %v375_v32  ;;  %v922_v38 = vcombine.low %v1096_v0, %v375_v32 }
  0x8f   : > { %vm554_vm6 = vcmask 732160  }
  0x90   : > { %v423_v39 = vsel %vm372_vm3, %v421_v36, %v422_v35  ;;  %674 = vmatprep.subr.bf16.mxu0 %v923_v37 }
  0x91   : > { %v425_v40 = vsel %vm424_vm7, %v418_v34, %v423_v39  ;;  %v384_v41 = vpop.permute.xlu0 %383  ;;  %v443_v42 = vpop.permute.xlu1 %442  ;;  %675 = vmatpush1.bf16.msra.mxu0 %v922_v38  ;;  %vm511_vm7 = vcmask 1044192  }
  0x92   : > { %387 = vst.msk [vmem:[#allocation2 + $0x14] sm:$0xf] %vm386_vm8, %v384_v41  ;;  %v926_v43 = vcombine.high %v400_v31, %v425_v40  ;;  %v925_v44 = vcombine.low %v400_v31, %v425_v40  ;;  %v446_v45 = vrot.slane %v443_v42, 4  ;;  %vm549_vm8 = vcmask 736256  }
  0x94   : > { %676 = vmatprep.subr.bf16.mxu0 %v926_v43 }
  0x95   : > { %v445_v46 = vpop.permute.xlu0 %444  ;;  %v468_v47 = vpop.permute.xlu1 %467  ;;  %677 = vmatpush1.bf16.msra.mxu0 %v925_v44 }
  0x96   : > { %v447_v48 = vrot.slane %v445_v46, 4  ;;  %455 = vst.msk [vmem:[#allocation2 + $0x38] sm:$0xf] %vm454_vm9, %v445_v46  ;;  %v471_v50 = vrot.slane %v468_v47, 4  ;;  %vm536_vm9 = vcmask 1044184  }
  0x98   : > { %v448_v49 = vsel %vm372_vm3, %v446_v45, %v447_v48 }
  0x99   : > { %v450_v51 = vsel %vm449_vm10, %v443_v42, %v448_v49  ;;  %v470_v52 = vpop.permute.xlu0 %469  ;;  %v409_v53 = vpop.permute.xlu1 %408  ;;  %v1004_v54 = vld [vmem:[#allocation2 + $0x8] ss:$12 sps:$4 sm:$0xff]   ;;  %vm561_vm10 = vcmask 1044176  }
  0x9a   : > { %v472_v55 = vrot.slane %v470_v52, 4  ;;  %480 = vst.msk [vmem:[#allocation2 + $0x44] sm:$0xf] %vm479_vm11, %v470_v52  ;;  %951 = vmatpush3.bf16.msra.mxu1 %v1004_v54  ;;  %vm660_vm11 = vcmask 588800  }
  0x9b   : > { %412 = vst.msk [vmem:[#allocation2 + $0x20] sm:$0xf] %vm411_vm12, %v409_v53  ;;  %952 = vmatprep.subr.bf16.mxu1 %v1035_v5 }
  0x9c   : > { %v473_v56 = vsel %vm372_vm3, %v471_v50, %v472_v55 }
  0x9d   : > { %v475_v57 = vsel %vm474_vm13, %v468_v47, %v473_v56  ;;  %v434_v58 = vpop.permute.xlu0 %433  ;;  %v493_v59 = vpop.permute.xlu1 %492 }
  0x9e   : > { %437 = vst.msk [vmem:[#allocation2 + $0x2c] sm:$0xf] %vm436_vm14, %v434_v58  ;;  %v929_v60 = vcombine.high %v450_v51, %v475_v57  ;;  %v928_v61 = vcombine.low %v450_v51, %v475_v57  ;;  %v496_v62 = vrot.slane %v493_v59, 4 }
  0xa0   : > { %678 = vmatprep.subr.bf16.mxu0 %v929_v60 }
  0xa1   : > { %v495_v63 = vpop.permute.xlu0 %494  ;;  %v518_v0 = vpop.permute.xlu1 %517  ;;  %679 = vmatpush1.bf16.msra.mxu0 %v928_v61 }
  0xa2   : > { %v497_v1 = vrot.slane %v495_v63, 4  ;;  %505 = vst.msk [vmem:[#allocation2 + $0x50] sm:$0xf] %vm504_vm15, %v495_v63  ;;  %v521_v3 = vrot.slane %v518_v0, 4 }
  0xa4   : > { %v498_v2 = vsel %vm372_vm3, %v496_v62, %v497_v1 }
  0xa5   : > { %v500_v4 = vsel %vm499_vm0, %v493_v59, %v498_v2  ;;  %v520_v6 = vpop.permute.xlu0 %519  ;;  %v459_v7 = vpop.permute.xlu1 %458  ;;  %v1005_v8 = vld [vmem:[#allocation2 + $0x20] ss:$12 sps:$4 sm:$0xff]  }
  0xa6   : > { %v522_v9 = vrot.slane %v520_v6, 4  ;;  %530 = vst.msk [vmem:[#allocation2 + $0x5c] sm:$0xf] %vm529_vm1, %v520_v6  ;;  %953 = vmatpush3.bf16.msra.mxu1 %v1005_v8 }
  0xa7   : > { %462 = vst.msk [vmem:[#allocation2 + $0x38] sm:$0xf] %vm461_vm2, %v459_v7  ;;  %954 = vmatprep.subr.bf16.mxu1 %v1035_v5 }
  0xa8   : > { %v523_v10 = vsel %vm372_vm3, %v521_v3, %v522_v9 }
  0xa9   : > { %v525_v11 = vsel %vm524_vm4, %v518_v0, %v523_v10  ;;  %v484_v12 = vpop.permute.xlu0 %483  ;;  %v543_v13 = vpop.permute.xlu1 %542 }
  0xaa   : > { %487 = vst.msk [vmem:[#allocation2 + $0x44] sm:$0xf] %vm486_vm5, %v484_v12  ;;  %v932_v14 = vcombine.high %v500_v4, %v525_v11  ;;  %v931_v15 = vcombine.low %v500_v4, %v525_v11  ;;  %v546_v16 = vrot.slane %v543_v13, 4 }
  0xac   : > { %680 = vmatprep.subr.bf16.mxu0 %v932_v14 }
  0xad   : > { %v545_v17 = vpop.permute.xlu0 %544  ;;  %v509_v18 = vpop.permute.xlu1 %508  ;;  %681 = vmatpush1.bf16.msra.mxu0 %v931_v15 }
  0xae   : > { %v547_v19 = vrot.slane %v545_v17, 4  ;;  %555 = vst.msk [vmem:[#allocation2 + $0x68] sm:$0xf] %vm554_vm6, %v545_v17 }
  0xaf   : > { %512 = vst.msk [vmem:[#allocation2 + $0x50] sm:$0xf] %vm511_vm7, %v509_v18 }
  0xb0   : > { %v548_v20 = vsel %vm372_vm3, %v546_v16, %v547_v19 }
  0xb1   : > { %v550_v21 = vsel %vm549_vm8, %v543_v13, %v548_v20  ;;  %v534_v22 = vpop.permute.xlu0 %533  ;;  %v559_v23 = vpop.permute.xlu1 %558  ;;  %v1006_v24 = vld [vmem:[#allocation2 + $0x38] ss:$12 sps:$4 sm:$0xff]  }
  0xb2   : > { %537 = vst.msk [vmem:[#allocation2 + $0x5c] sm:$0xf] %vm536_vm9, %v534_v22  ;;  %v935_v25 = vcombine.high %v550_v21, %v550_v21  ;;  %v934_v26 = vcombine.low %v550_v21, %v550_v21  ;;  %955 = vmatpush3.bf16.msra.mxu1 %v1006_v24 }
  0xb3   : > { %562 = vst.msk [vmem:[#allocation2 + $0x68] sm:$0xf] %vm561_vm10, %v559_v23  ;;  %956 = vmatprep.subr.bf16.mxu1 %v1035_v5 }
  0xb4   : > { %937 = vmatprep.subr.msk.bf16.mxu0 %vm372_vm3, %v935_v25  ;;  %v666_v27 = vsel %vm372_vm3, %v934_v26, 0 }
  0xb5   : > { %683 = vmatpush1.bf16.msra.mxu0 %v666_v27 }
  0xb8   : > { %938 = vmatmul.mubr.msk.bf16.vlgmr.msra.gmra.mrb[0].mxu0 %vm660_vm11, %v563_v28 }
  0xb9   : > { %v1007_v29 = vld [vmem:[#allocation2 + $0x50] ss:$12 sps:$4 sm:$0xff]  }
  0xba   : > { %v1008_v30 = vld [vmem:[#allocation2 + $0x68] ss:$0 sps:$4 sm:$0xff]   ;;  %957 = vmatpush3.bf16.msra.mxu1 %v1007_v29 }
  0xbb   : > { %958 = vmatprep.subr.bf16.mxu1 %v1035_v5  ;;  %v672_v31 = vsel %vm372_vm3, %v1008_v30, 0 }
  0xbe   : > { %959 = vmatpush3.bf16.msra.mxu1 %v672_v31 }
  0xc1   : > { %961 = vmatmul.mubr.msk.bf16.vlgmr.msra.gmra.mrb[0].mxu1 %vm660_vm11, %v563_v28 }
  0xc2   : > { %v586_v32 = vpop.permute.xlu0 %585 }
 0x18b   : > { %v708_v33 = vpop.f32.mrb[0].mxu0 }
 0x18c   : > { %v710_v34 = vpop.f32.mrb[1].mxu0  ;;  %v709_v35 = vadd.f32 %v708_v33, %v586_v32 }
 0x18d   : > { %v711_v36 = vadd.f32 %v710_v34, %v586_v32  ;;  %v712_v37 = vpop.f32.mrb[2].mxu0 }
 0x18e   : > { %755 = vst [vmem:[%s351_s20] sm:$0xff] %v709_v35  ;;  %v713_v38 = vpop.f32.mrb[3].mxu0 }
 0x18f   : > { %756 = vst [vmem:[%s351_s20 + $0x8] sm:$0xff] %v711_v36 }
 0x194   : > { %v749_v39 = vpop.f32.mrb[0].mxu1 }
 0x195   : > { %v750_v5 = vadd.f32 %v749_v39, %v586_v32  ;;  %v962_v40 = vpop.f32.mrb[1].mxu1 }
 0x196   : > { %v752_v41 = vpop.f32.mrb[2].mxu1 }
 0x197   : > { %757 = vst [vmem:[%s351_s20 + $0x10] sm:$0xff] %v750_v5  ;;  %v963_v42 = vpop.f32.mrb[3].mxu1 }
 0x198 PF: > { %s14_s17 = sadd.s32 1, %s1031_s17   ;;  %s1171_s15 = smov %s1027_s16 }
 0x199   : > { %p11_p5 = scmp.ge.s32.totalorder %s14_s17, 4   ;;  %s1172_s16 = smov %s1174_s18 }
 0x19b   :  { %13 = sbr.rel (!%p11_p5) target bundleno = 2 (0x2), region = 79 }

</bundles_post_ra>
